<compile_context>
chip_gen: v5e
topology: v5e:2x2
jax: 0.10.0
libtpu: 0.0.40
codegen_flags: <defaults>
</compile_context>

<pallas_src>
import functools

import jax
import jax.numpy as jnp
from jax import lax
from jax.experimental import pallas as pl
from jax.experimental.pallas import tpu as pltpu


def _round_up(x, m):
    return (x + m - 1) // m * m


def _cdiv(a, b):
    return -(-a // b)


def _sublane_unit(dtype):
    # Sub-32-bit dtypes pack multiple rows per sublane tile.
    return {4: 8, 2: 16, 1: 32}.get(jnp.dtype(dtype).itemsize, 8)


def _vmem_limit_bytes():
    """Physical VMEM capacity minus 16 MiB headroom (generation aware)."""
    capacity = 64 << 20  # conservative fallback = v7x per-TC VMEM
    try:
        capacity = int(pltpu.get_tpu_info().vmem_capacity_bytes)
    except Exception:
        pass
    return max(32 << 20, capacity - (16 << 20))


def _choose_tile_n(outdim, indim, w_bytes, vmem_limit, tile_m_hint=256):
    """Largest lane-dense class tile whose pipeline buffers fit the VMEM budget."""
    target = 1024 if vmem_limit >= (96 << 20) else 512
    budget = int(vmem_limit * 0.8)
    x_bytes = 4  # conservative (f32 activations)
    fixed = 2 * tile_m_hint * indim * x_bytes + tile_m_hint * indim * 4  # x bufs + f32 temp
    per_n = (2 * indim * w_bytes           # weight double-buffer
             + 2 * tile_m_hint * x_bytes   # output double-buffer
             + tile_m_hint * 4             # f32 accumulator / epilogue temps
             + 8)                          # weight_g row
    avail = budget - fixed
    if avail < per_n * 128:
        # TODO(synk): add a K-tiled (indim) accumulation path for very large indim.
        fit = 128
    else:
        fit = (avail // per_n) // 128 * 128
    return max(128, min(target, _round_up(outdim, 128), fit))


def _dist_linear_kernel(x_ref, wvt_ref, wg_ref, out_ref, *, scale):
    # Grid = (j: class tiles, i: batch tiles), both "parallel" (no cross-step state).

    # Per-class column scale = scale_factor * g / ||v||_2, recomputed each step
    # (tiny vs. the matmul) so no scratch / ordering requirement exists.
    wvt = wvt_ref[...]                                           # [indim, tile_n]
    wvt_f = wvt.astype(jnp.float32)
    w_sq = jnp.sum(wvt_f * wvt_f, axis=0, keepdims=True)         # [1, tile_n]
    # WeightNorm has no eps; the clamp only protects zero-padded class columns
    # from 0 * inf = NaN (padded columns also have g == 0 -> scale 0).
    inv_wnorm = lax.rsqrt(jnp.maximum(w_sq, 1e-37))              # EUP rsqrt
    col_scale = scale * wg_ref[...].astype(jnp.float32) * inv_wnorm

    # Row-wise inverse L2 norm of x; the +1e-5 lives on the norm, matching the
    # PyTorch code.  Folded into the epilogue: raw x goes straight to the MXU.
    x = x_ref[...]                                               # [tile_m, indim]
    xf = x.astype(jnp.float32)
    x_sq = jnp.sum(xf * xf, axis=1, keepdims=True)               # [tile_m, 1]
    inv_xnorm = pl.reciprocal(jnp.sqrt(x_sq) + 1e-5, approx=True)  # EUP recip

    # [tile_m, indim] @ [indim, tile_n], f32 accumulation on the MXU, then the
    # combined row/column scaling in a single [tile_m, tile_n] epilogue multiply.
    acc = jnp.dot(x, wvt, preferred_element_type=jnp.float32)
    out_ref[...] = (acc * inv_xnorm * col_scale).astype(out_ref.dtype)


def _dist_linear_call(x, wvt_pad, wg_row_pad, outdim, scale, tile_n, vmem_limit):
    n, indim = x.shape
    out_pad = wvt_pad.shape[1]

    # Adaptive batch tile: multiple of the dtype's sublane packing, sized so a
    # ragged batch does not pad up to a full 256-row tile.
    m_unit = _sublane_unit(x.dtype)
    tile_m_target = 256
    num_m = max(1, _cdiv(n, tile_m_target))
    tile_m = _round_up(_cdiv(n, num_m), m_unit)
    n_pad = _round_up(n, tile_m)

    x_p = jnp.pad(x, ((0, n_pad - n), (0, 0))) if n_pad != n else x
    grid = (out_pad // tile_n, n_pad // tile_m)          # (j classes, i batch)
    kernel = functools.partial(_dist_linear_kernel, scale=float(scale))

    out = pl.pallas_call(
        kernel,
        out_shape=jax.ShapeDtypeStruct((n_pad, out_pad), x.dtype),
        grid=grid,
        in_specs=[
            pl.BlockSpec((tile_m, indim), lambda j, i: (i, 0)),   # x
            pl.BlockSpec((indim, tile_n), lambda j, i: (0, j)),   # weight_v.T
            pl.BlockSpec((1, tile_n), lambda j, i: (0, j)),       # weight_g row
        ],
        out_specs=pl.BlockSpec((tile_m, tile_n), lambda j, i: (i, j)),
        compiler_params=pltpu.CompilerParams(
            dimension_semantics=("parallel", "parallel"),
            vmem_limit_bytes=vmem_limit),
    )(x_p, wvt_pad, wg_row_pad)

    return out[:n, :outdim]


def make_dist_linear(weight_v, weight_g, scale_factor=None, *, weights_dtype=None):
    """One-time weight layout prep (transpose + pad [+ optional narrow cast]).

    Returns apply(x) -> scores.  Classifier weights are static, so this hoists
    the HBM-copying layout ops out of the per-call path.  Pass
    weights_dtype=jnp.bfloat16 to halve weight streaming bytes (kernel is
    typically HBM-bound on weights) when the numerics allow it.
    """
    outdim, indim = weight_v.shape
    if scale_factor is None:
        scale_factor = 2 if outdim <= 200 else 10

    vmem_limit = _vmem_limit_bytes()
    w_dtype = weight_v.dtype if weights_dtype is None else jnp.dtype(weights_dtype)
    tile_n = _choose_tile_n(outdim, indim, jnp.dtype(w_dtype).itemsize, vmem_limit)
    out_pad = _round_up(outdim, tile_n)

    wvt = weight_v.T.astype(w_dtype)                              # [indim, outdim]
    wg_row = weight_g.reshape(1, outdim).astype(jnp.float32)      # lane-dense g
    if out_pad != outdim:
        wvt = jnp.pad(wvt, ((0, 0), (0, out_pad - outdim)))
        wg_row = jnp.pad(wg_row, ((0, 0), (0, out_pad - outdim)))
    wvt = jax.block_until_ready(wvt)
    wg_row = jax.block_until_ready(wg_row)

    def apply(x):
        return _dist_linear_call(x, wvt, wg_row, outdim, scale_factor,
                                 tile_n, vmem_limit)

    return apply


def dist_linear(x, weight_v, weight_g, scale_factor=None, *, weights_dtype=None):
    """Convenience wrapper.  For repeated calls prefer make_dist_linear so the
    transposed/padded weight layout is cached instead of rebuilt per call."""
    return make_dist_linear(weight_v, weight_g, scale_factor,
                            weights_dtype=weights_dtype)(x)


def dist_linear_ref(x, weight_v, weight_g, scale_factor):
    # Pure-JAX reference (exact math) for the correctness check.
    x_norm = jnp.sqrt(jnp.sum(x * x, axis=1, keepdims=True))
    x_n = x / (x_norm + 1e-5)
    w_norm = jnp.sqrt(jnp.sum(weight_v * weight_v, axis=1, keepdims=True))
    w_eff = weight_g * weight_v / w_norm
    return scale_factor * (x_n @ w_eff.T)


def _make_params(key, outdim, indim):
    # WeightNorm.apply(L, 'weight', dim=0): weight_v <- initial weight,
    # weight_g <- per-row L2 norm of weight_v.
    weight_v = jax.random.normal(key, (outdim, indim), dtype=jnp.float32) * 0.1
    weight_g = jnp.sqrt(jnp.sum(weight_v * weight_v, axis=1, keepdims=True))
    return weight_v, weight_g


if __name__ == "__main__":
    key = jax.random.PRNGKey(0)
    kx, kw, kx2, kw2 = jax.random.split(key, 4)

    # Primary small test, shapes consistent with the module: indim=32, outdim=16.
    indim, outdim, batch = 32, 16, 8
    scale_factor = 2 if outdim <= 200 else 10
    x = jax.random.normal(kx, (batch, indim), dtype=jnp.float32)
    weight_v, weight_g = _make_params(kw, outdim, indim)

    scores = dist_linear(x, weight_v, weight_g, scale_factor)
    jax.block_until_ready(scores)
    ref = dist_linear_ref(x, weight_v, weight_g, scale_factor)
    assert scores.shape == (batch, outdim)
    # approx-reciprocal on the x-norm path slightly loosens agreement vs f32 ref.
    assert jnp.allclose(scores, ref, atol=1e-2, rtol=1e-2)

    # Secondary test exercising ragged-batch tiling, class padding, and the
    # cached-weights factory path (weights prepped once, applied twice).
    indim2, outdim2, batch2 = 64, 200, 300
    scale2 = 2 if outdim2 <= 200 else 10
    x2 = jax.random.normal(kx2, (batch2, indim2), dtype=jnp.float32)
    wv2, wg2 = _make_params(kw2, outdim2, indim2)
    apply2 = make_dist_linear(wv2, wg2, scale2)
    scores2 = apply2(x2)
    jax.block_until_ready(scores2)
    scores2b = jax.block_until_ready(apply2(x2))   # reuse cached weight layout
    ref2 = dist_linear_ref(x2, wv2, wg2, scale2)
    assert scores2.shape == (batch2, outdim2)
    assert jnp.all(jnp.isfinite(scores2))
    assert jnp.allclose(scores2, ref2, atol=1e-2, rtol=1e-2)
    assert jnp.allclose(scores2b, scores2)

    print("KERNEL_OK")
</pallas_src>

<mosaic_0001>
module attributes {stable_mosaic.version = 11 : i64} {
  func.func @_dist_linear_kernel(%arg0: i32, %arg1: i32, %arg2: memref<8x32xf32, #tpu.memory_space<vmem>>, %arg3: memref<32x128xf32, #tpu.memory_space<vmem>>, %arg4: memref<1x128xf32, #tpu.memory_space<vmem>>, %arg5: memref<8x128xf32, #tpu.memory_space<vmem>>) attributes {dimension_semantics = [#tpu.dimension_semantics<parallel>, #tpu.dimension_semantics<parallel>], iteration_bounds = array<i64: 1, 1>, scalar_prefetch = 0 : i64, scratch_operands = 0 : i64, tpu.core_type = #tpu.core_type<tc>, window_params = [{transform_indices = @transform_0, window_bounds = array<i64: 8, 32>}, {transform_indices = @transform_1, window_bounds = array<i64: 32, 128>}, {transform_indices = @transform_2, window_bounds = array<i64: 1, 128>}, {transform_indices = @transform_3, window_bounds = array<i64: 8, 128>}]} {
    %c0 = arith.constant 0 : index
    %c0_0 = arith.constant 0 : index
    %0 = vector.load %arg3[%c0, %c0_0] : memref<32x128xf32, #tpu.memory_space<vmem>>, vector<32x128xf32>
    %1 = arith.mulf %0, %0 : vector<32x128xf32>
    %cst = arith.constant dense<0.000000e+00> : vector<128xf32>
    %2 = vector.multi_reduction <add>, %1, %cst [0] : vector<32x128xf32> to vector<128xf32>
    %3 = vector.shape_cast %2 : vector<128xf32> to vector<1x128xf32>
    %cst_1 = arith.constant 9.99999991E-38 : f32
    %4 = vector.broadcast %cst_1 : f32 to vector<1x128xf32>
    %5 = arith.maximumf %3, %4 : vector<1x128xf32>
    %6 = math.rsqrt %5 : vector<1x128xf32>
    %c0_2 = arith.constant 0 : index
    %c0_3 = arith.constant 0 : index
    %7 = vector.load %arg4[%c0_2, %c0_3] : memref<1x128xf32, #tpu.memory_space<vmem>>, vector<1x128xf32>
    %cst_4 = arith.constant 2.000000e+00 : f32
    %8 = vector.broadcast %cst_4 : f32 to vector<1x128xf32>
    %9 = arith.mulf %8, %7 : vector<1x128xf32>
    %10 = arith.mulf %9, %6 : vector<1x128xf32>
    %c0_5 = arith.constant 0 : index
    %c0_6 = arith.constant 0 : index
    %11 = vector.load %arg2[%c0_5, %c0_6] : memref<8x32xf32, #tpu.memory_space<vmem>>, vector<8x32xf32>
    %12 = arith.mulf %11, %11 : vector<8x32xf32>
    %cst_7 = arith.constant dense<0.000000e+00> : vector<8xf32>
    %13 = vector.multi_reduction <add>, %12, %cst_7 [1] : vector<8x32xf32> to vector<8xf32>
    %14 = vector.shape_cast %13 : vector<8xf32> to vector<8x1xf32>
    %15 = math.sqrt %14 : vector<8x1xf32>
    %cst_8 = arith.constant 9.99999974E-6 : f32
    %16 = vector.broadcast %cst_8 : f32 to vector<8x1xf32>
    %17 = arith.addf %15, %16 : vector<8x1xf32>
    %18 = tpu.reciprocal %17 {approx = true} : vector<8x1xf32> -> vector<8x1xf32>
    %cst_9 = arith.constant dense<0.000000e+00> : vector<8x128xf32>
    %19 = tpu.matmul %11, %0, %cst_9 {dimension_numbers = #tpu.dot_dimension_numbers<[1], [0], [0], [1], [0, 0, 1, 1], [], []>} : vector<8x32xf32>, vector<32x128xf32>, vector<8x128xf32> -> vector<8x128xf32>
    %20 = vector.broadcast %18 : vector<8x1xf32> to vector<8x128xf32>
    %21 = arith.mulf %19, %20 : vector<8x128xf32>
    %22 = vector.broadcast %10 : vector<1x128xf32> to vector<8x128xf32>
    %23 = arith.mulf %21, %22 : vector<8x128xf32>
    %c0_10 = arith.constant 0 : index
    %c0_11 = arith.constant 0 : index
    %24 = vector.load %arg5[%c0_10, %c0_11] : memref<8x128xf32, #tpu.memory_space<vmem>>, vector<8x128xf32>
    tpu.vector_store %arg5[%c0_10, %c0_11], %23 {strides = array<i32>} : memref<8x128xf32, #tpu.memory_space<vmem>>, vector<8x128xf32>,
    return
  }
  func.func @transform_0(%arg0: i32, %arg1: i32) -> (i32, i32) {
    %c0_i32 = arith.constant 0 : i32
    %c0_i32_0 = arith.constant 0 : i32
    return %arg1, %c0_i32 : i32, i32
  }
  func.func @transform_1(%arg0: i32, %arg1: i32) -> (i32, i32) {
    %c0_i32 = arith.constant 0 : i32
    %c0_i32_0 = arith.constant 0 : i32
    return %c0_i32, %arg0 : i32, i32
  }
  func.func @transform_2(%arg0: i32, %arg1: i32) -> (i32, i32) {
    %c0_i32 = arith.constant 0 : i32
    %c0_i32_0 = arith.constant 0 : i32
    return %c0_i32, %arg0 : i32, i32
  }
  func.func @transform_3(%arg0: i32, %arg1: i32) -> (i32, i32) {
    %c0_i32 = arith.constant 0 : i32
    return %arg1, %arg0 : i32, i32
  }
}

</mosaic_0001>

<bundles_post_ra>
// kernel: tpu_custom_call.1
= control target key start
LH: loop header
LB: loop body
LE: loop exit
PB: predicated region body
PF: predicated region fallthrough
CT: control target
= control target key end

     0   :  { %8 = vsyncpa [#allocation3], 0  ;;  %s272_s0 = inlined_call_operand.hbm [shape: f32[8,32], index: 0, kind: input, shape index: {}]   ;;  %s273_s1 = inlined_call_operand.hbm [shape: f32[32,128], index: 1, kind: input, shape index: {}]   ;;  %s274_s2 = inlined_call_operand.vmem [shape: f32[1,128], index: 2, kind: input, shape index: {}]   ;;  %s275_s3 = inlined_call_operand.hbm [shape: f32[8,128], index: 3, kind: output, shape index: {}]  }
   0x1   :  { %9 = vsyncpa [#allocation6], 0 }
   0x2   :  { %10 = vsyncpa [#allocation4], 0  ;;  %s16_s14 = sshll.u32 %s272_s0, 4  ;;  %s233_s15 = smov [#allocation2]   ;;  %s17_s14 = int_to_ptr.hbm [resolvable:$true] %s16_s14 }
   0x3   :  { %s18_s16 = sshll.u32 %s233_s15, 4  ;;  %s26_s19 = sshll.u32 %s273_s1, 4  ;;  %s19_s16 = int_to_ptr.vmem [resolvable:$true] %s18_s16  ;;  %s27_s19 = int_to_ptr.hbm [resolvable:$true] %s26_s19 }
   0x4   :  { %21 = dma.hbm_to_vmem [thread:$0]  %s17_s14, 128, %s19_s16, [#allocation3]  }
   0x5   :  { %s234_s20 = smov [#allocation5]   ;;  %s235_s22 = smov 128  }
   0x6   :  { %s28_s21 = sshll.u32 %s234_s20, 4  ;;  %s236_s23 = smov 8   ;;  %s29_s21 = int_to_ptr.vmem [resolvable:$true] %s28_s21 }
   0x7   :  { %34 = dma.hbm_to_vmem [thread:$0]  %s27_s19, 512, %s29_s21, [#allocation6], %s235_s22, %s235_s22, %s236_s23  }
   0x8   :  { %227 = dma.done.wait [#allocation3], 128  }
   0x9   :  { %228 = vsyncadd [#allocation3], 4294967168 }
   0xa   :  { %229 = dma.done.wait [#allocation6], 512  }
   0xb   :  { %230 = vsyncadd [#allocation6], 4294966784  ;;  %v76_v0 = vld [vmem:[#allocation2] sm:$0xff]  ;;  %vm78_vm0 = vcmask 261120   ;;  %v47_v2 = vld [vmem:[#allocation5 + $0x10] sm:$0xff]  ;;  %s237_s24 = smov [#allocation7]  }
   0xc   :  { %v48_v1 = vld [vmem:[#allocation5 + $0x18] sm:$0xff]  ;;  %v77_v3 = vmul.f32 %v76_v0, %v76_v0  ;;  %v46_v4 = vld [vmem:[#allocation5 + $0x8] sm:$0xff]  ;;  %v45_v5 = vld [vmem:[#allocation5] sm:$0xff]  ;;  %v51_v6 = vmul.f32 %v47_v2, %v47_v2  ;;  %s130_s25 = sshll.u32 %s237_s24, 4  ;;  %s131_s25 = int_to_ptr.vmem [resolvable:$true] %s130_s25 }
   0xd   :  { %111 = vmatpush.msra.mxu0 %v48_v1  ;;  %v50_v7 = vmul.f32 %v46_v4, %v46_v4  ;;  %v49_v8 = vmul.f32 %v45_v5, %v45_v5  ;;  %v52_v10 = vmul.f32 %v48_v1, %v48_v1  ;;  %v73_v35 = vld [vmem:[%s274_s2] sm:$0x1]  ;;  %s132_s2 = sshll.u32 %s275_s3, 4  ;;  %s133_s2 = int_to_ptr.hbm [resolvable:$true] %s132_s2 }
   0xe   :  { %v79_v9 = vsel %vm78_vm0, %v77_v3, 0.0  ;;  %v74_v38 = vmul.f32 2.0, %v73_v35 }
   0xf   :  { %112 = vmatpush.msra.mxu0 %v47_v2  ;;  %80 = vadd.xlane.f32.xlu0 %v79_v9  ;;  %v53_v11 = vadd.f32 %v50_v7, %v49_v8 }
  0x11   :  { %113 = vmatpush.msra.mxu0 %v46_v4  ;;  %v54_v12 = vadd.f32 %v53_v11, %v51_v6 }
  0x13   :  { %114 = vmatpush.msra.mxu0 %v45_v5  ;;  %v55_v13 = vadd.f32 %v54_v12, %v52_v10 }
  0x14   :  { %143 = vmatmul.msk.f32.vlgmr.msra.gmra.mxu0 %vm78_vm0, %v76_v0 }
  0x15   :  { %v56_v14 = vrot.slane %v55_v13, 4 }
  0x17   :  { %v57_v15 = vadd.f32 %v56_v14, %v55_v13 }
  0x19   :  { %v58_v16 = vrot.slane %v57_v15, 2 }
  0x1b   :  { %v59_v17 = vadd.f32 %v58_v16, %v57_v15 }
  0x1d   :  { %v60_v18 = vrot.slane %v59_v17, 1 }
  0x1f   :  { %v61_v19 = vadd.f32 %v60_v18, %v59_v17 }
  0x21   :  { %v62_v20 = vmax.f32 %v61_v19, 1e-37 }
  0x23   :  { %149 = vrsqrt.f32 %v62_v20  ;;  %vm69_vm1 = vweird.f32 %v62_v20 }
  0x29   :  { %v150_v21 = vpop.eup %149 }
  0x2a   :  { %v64_v23 = vmul.f32 %v150_v21, %v62_v20  ;;  %vm70_vm2 = vweird.f32 %v150_v21 }
  0x2b   :  { %vm71_vm4 = vmor %vm69_vm1, %vm70_vm2 }
  0x2c   :  { %v65_v24 = vmul.f32 %v150_v21, %v64_v23 }
  0x2e   :  { %v66_v28 = vmul.f32 0.5, %v65_v24 }
  0x30   :  { %v67_v31 = vsub.f32 1.5, %v66_v28 }
  0x32   :  { %v68_v34 = vmul.f32 %v150_v21, %v67_v31 }
  0x34   :  { %v72_v40 = vsel %vm71_vm4, %v150_v21, %v68_v34 }
  0x35   :  { %v75_v42 = vmul.f32 %v74_v38, %v72_v40 }
  0x37   :  { %v121_v44 = vperm.slane %v75_v42, 0 }
  0x82   :  { %v81_v22 = vpop.xlane.xlu0 %80 }
  0x83   :  { %151 = vrsqrt.f32 %v81_v22  ;;  %vm89_vm3 = vcmp.eq.f32.partialorder %v81_v22, inf  ;;  %v92_v36 = vand.u32 2147483648, %v81_v22  ;;  %vm91_vm5 = vcmp.eq.f32.partialorder %v81_v22, 0.0 }
  0x89   :  { %v152_v25 = vpop.eup %151 }
  0x8a   :  { %v83_v26 = vmul.f32 %v152_v25, %v81_v22 }
  0x8c   :  { %v84_v27 = vmul.f32 %v152_v25, %v83_v26 }
  0x8e   :  { %v85_v29 = vmul.f32 0.5, %v84_v27 }
  0x90   :  { %v86_v30 = vsub.f32 1.5, %v85_v29 }
  0x91   :  { %v116_v43 = vpop.f32.mrf.mxu0 }
  0x92   :  { %v87_v32 = vmul.f32 %v152_v25, %v86_v30 }
  0x94   :  { %v88_v33 = vmul.f32 %v87_v32, %v81_v22 }
  0x96   :  { %v90_v37 = vsel %vm89_vm3, %v81_v22, %v88_v33 }
  0x97   :  { %v93_v39 = vsel %vm91_vm5, %v92_v36, %v90_v37 }
  0x98   :  { %v94_v41 = vadd.f32 1e-05, %v93_v39 }
  0x9a   :  { %153 = vrcp.f32 %v94_v41 }
  0xa0   :  { %v154_v45 = vpop.eup %153 }
  0xa1   :  { %v119_v46 = vmul.f32 %v154_v45, %v116_v43 }
  0xa3   :  { %v123_v47 = vmul.f32 %v121_v44, %v119_v46 }
  0xa5   :  { %124 = vst [vmem:[#allocation7] sm:$0xff] %v123_v47 }
  0xa6   :  { %135 = dma.vmem_to_hbm [thread:$0]  %s131_s25, 128, %s133_s2, [#allocation4]  }
  0xa7   :  { %231 = dma.done.wait [#allocation4], 128  }
  0xa8   :  { %232 = vsyncadd [#allocation4], 4294967168 }
  0xa9   :  { %140 = vsyncpa [#allocation3], 1 }
  0xaa   :  { %141 = vsyncpa [#allocation6], 1 }
  0xab   :  { %142 = vsyncpa [#allocation4], 1 }

</bundles_post_ra>
